<compile_context>
chip_gen: v5e
topology: v5e:2x2
jax: 0.10.0
libtpu: 0.0.40
codegen_flags: <defaults>
</compile_context>

<pallas_src>
import functools

import jax
import jax.numpy as jnp
from jax.experimental import pallas as pl
from jax.experimental.pallas import tpu as pltpu


def _pointmlp_kernel(x_ref, w1_ref, b1_ref, w2_ref, b2_ref, o_ref):
    # x_ref: (C, T)    w1_ref: (Hd, C)   b1_ref: (Hd, 1)
    # w2_ref: (C, Hd)  b2_ref: (C, 1)    o_ref: (C, T)
    x = x_ref[...]                                                  # streamed dtype

    # fc1: (Hd, C) @ (C, T) -> (Hd, T), f32 accumulation on the MXU.
    h = jnp.dot(w1_ref[...], x, preferred_element_type=jnp.float32)
    h = h + b1_ref[...].astype(jnp.float32)                         # bias over lanes
    h = h * jax.nn.sigmoid(h)                                       # SiLU in f32 (EUP)

    # fc2: (C, Hd) @ (Hd, T) -> (C, T); cast hidden back to the weight dtype so
    # bf16 models hit the native bf16xbf16->f32 MXU path.
    h = h.astype(w2_ref.dtype)
    y = jnp.dot(w2_ref[...], h, preferred_element_type=jnp.float32)
    y = y + b2_ref[...].astype(jnp.float32)

    o_ref[...] = y.astype(o_ref.dtype)


def _pick_spatial_tile(HW, B, cap):
    """Largest multiple-of-128 divisor of HW (<= cap); prefers >= 8 grid steps."""
    if HW % 128 != 0:
        # Ragged spatial extent: use the full axis as a single (un-tiled) block
        # (block dim == full array dim is always legal) -- no padding needed.
        return HW
    cap = max(128, (min(int(cap), HW) // 128) * 128)
    cands = [d for d in range(128, cap + 1, 128) if HW % d == 0]    # 128 always divides
    best = cands[-1]                                                # biggest exact tile
    # Prefer enough total grid steps for megacore sharding / pipelining, while
    # keeping tiles lane-rich (>= 512 lanes per DMA).
    for t in sorted(cands, reverse=True):
        if t >= 512 and B * (HW // t) >= 8:
            best = t
            break
    return best


@functools.partial(jax.jit, static_argnames=("tile_hw",))
def _pointmlp_3d(x3, w1, b1_2d, w2, b2_2d, tile_hw):
    """x3: (B, C, HW) with HW % tile_hw == 0. Returns (B, C, HW)."""
    B, C, HW = x3.shape
    Hd = w1.shape[0]
    t = int(tile_hw)
    n_tiles = HW // t
    itemsize = jnp.dtype(x3.dtype).itemsize
    w_itemsize = jnp.dtype(w1.dtype).itemsize

    # Actual VMEM footprint: double-buffered x/y tiles + f32 hidden + weights.
    tile_bytes = C * t * itemsize
    vmem_need = (4 * tile_bytes                 # 2 bufs x (in tile + out tile)
                 + Hd * t * 4                   # f32 hidden activation
                 + 2 * Hd * C * w_itemsize      # w1 + w2
                 + (Hd + C) * 4)                # biases
    vmem_limit = int(min(max(2 * vmem_need, 32 << 20), 48 << 20))

    cost = pl.CostEstimate(
        flops=4 * B * HW * C * Hd,                     # two matmuls, 2 flops/MAC
        transcendentals=B * HW * Hd,                   # sigmoid
        bytes_accessed=2 * B * C * HW * itemsize       # stream x in, y out
        + (2 * C * Hd + C + Hd) * w_itemsize,          # small weights/biases
    )

    return pl.pallas_call(
        _pointmlp_kernel,
        out_shape=jax.ShapeDtypeStruct((B, C, HW), x3.dtype),
        grid_spec=pltpu.PrefetchScalarGridSpec(
            num_scalar_prefetch=0,
            grid=(B, n_tiles),
            in_specs=[
                # Leading batch dim squeezed: kernel body sees (C, T) directly.
                pl.BlockSpec((None, C, t), lambda b, s: (b, 0, s)),
                pl.BlockSpec((Hd, C), lambda b, s: (0, 0)),
                pl.BlockSpec((Hd, 1), lambda b, s: (0, 0)),
                pl.BlockSpec((C, Hd), lambda b, s: (0, 0)),
                pl.BlockSpec((C, 1), lambda b, s: (0, 0)),
            ],
            out_specs=pl.BlockSpec((None, C, t), lambda b, s: (b, 0, s)),
        ),
        compiler_params=pltpu.CompilerParams(
            dimension_semantics=("parallel", "parallel"),
            vmem_limit_bytes=vmem_limit,
        ),
        cost_estimate=cost,
    )(x3, w1, b1_2d, w2, b2_2d)


def pointmlp_nchw(x, w1, b1, w2, b2, tile_hw=8192):
    """PointMlp forward on an NCHW tensor.

    x:  (B, dim, H, W)
    w1: (hidden, dim)   b1: (hidden,)    -- Conv2d(dim, hidden, 1) weights
    w2: (dim, hidden)   b2: (dim,)       -- Conv2d(hidden, dim, 1) weights
    """
    B, C, H, W = x.shape
    HW = H * W
    # Zero-copy layout: channels on sublanes, pixels on lanes (no transposes).
    x3 = x.reshape(B, C, HW)

    # Exact spatial tiling -- no host-side pad / slice HBM round trip.
    t = _pick_spatial_tile(HW, B, tile_hw)

    y3 = _pointmlp_3d(x3, w1, b1.reshape(-1, 1), w2, b2.reshape(-1, 1), t)
    return y3.reshape(B, C, H, W)


def _reference(x, w1, b1, w2, b2):
    xt = jnp.transpose(x, (0, 2, 3, 1)).astype(jnp.float32)      # (B,H,W,C)
    h = jnp.einsum("bhwc,oc->bhwo", xt, w1.astype(jnp.float32)) + b1
    h = h * jax.nn.sigmoid(h)
    y = jnp.einsum("bhwo,co->bhwc", h, w2.astype(jnp.float32)) + b2
    return jnp.transpose(y, (0, 3, 1, 2)).astype(x.dtype)


if __name__ == "__main__":
    key = jax.random.PRNGKey(0)
    B, dim, H, W = 2, 4, 16, 16
    mlp_ratio = 4
    hidden = int(dim * mlp_ratio)

    k1, k2, k3, k4, k5 = jax.random.split(key, 5)
    x = jax.random.normal(k1, (B, dim, H, W), dtype=jnp.float32)
    # Conv2d 1x1 weights collapse to dense matrices: (out_ch, in_ch).
    w1 = 0.1 * jax.random.normal(k2, (hidden, dim), dtype=jnp.float32)
    b1 = 0.1 * jax.random.normal(k3, (hidden,), dtype=jnp.float32)
    w2 = 0.1 * jax.random.normal(k4, (dim, hidden), dtype=jnp.float32)
    b2 = 0.1 * jax.random.normal(k5, (dim,), dtype=jnp.float32)

    y = pointmlp_nchw(x, w1, b1, w2, b2)
    y = jax.block_until_ready(y)

    y_ref = _reference(x, w1, b1, w2, b2)
    assert y.shape == x.shape and y.dtype == x.dtype
    assert jnp.allclose(y, y_ref, atol=1e-4, rtol=1e-4), float(
        jnp.max(jnp.abs(y - y_ref))
    )

    print("KERNEL_OK")
</pallas_src>

<mosaic_0001>
module attributes {stable_mosaic.version = 11 : i64} {
  func.func @_pointmlp_kernel(%arg0: i32, %arg1: i32, %arg2: memref<1x4x256xf32, #tpu.memory_space<vmem>>, %arg3: memref<16x4xf32, #tpu.memory_space<vmem>>, %arg4: memref<16x1xf32, #tpu.memory_space<vmem>>, %arg5: memref<4x16xf32, #tpu.memory_space<vmem>>, %arg6: memref<4x1xf32, #tpu.memory_space<vmem>>, %arg7: memref<1x4x256xf32, #tpu.memory_space<vmem>>) attributes {dimension_semantics = [#tpu.dimension_semantics<parallel>, #tpu.dimension_semantics<parallel>], iteration_bounds = array<i64: 2, 1>, scalar_prefetch = 0 : i64, scratch_operands = 0 : i64, tpu.core_type = #tpu.core_type<tc>, window_params = [{transform_indices = @transform_0, window_bounds = array<i64: 1, 4, 256>}, {pipeline_mode = #tpu.pipeline_mode<synchronous>, transform_indices = @transform_1, window_bounds = array<i64: 16, 4>}, {pipeline_mode = #tpu.pipeline_mode<synchronous>, transform_indices = @transform_2, window_bounds = array<i64: 16, 1>}, {pipeline_mode = #tpu.pipeline_mode<synchronous>, transform_indices = @transform_3, window_bounds = array<i64: 4, 16>}, {pipeline_mode = #tpu.pipeline_mode<synchronous>, transform_indices = @transform_4, window_bounds = array<i64: 4, 1>}, {transform_indices = @transform_5, window_bounds = array<i64: 1, 4, 256>}]} {
    %c0 = arith.constant 0 : index
    %c0_0 = arith.constant 0 : index
    %c0_1 = arith.constant 0 : index
    %0 = vector.load %arg2[%c0, %c0_0, %c0_1] : memref<1x4x256xf32, #tpu.memory_space<vmem>>, vector<1x4x256xf32>
    %1 = vector.shape_cast %0 : vector<1x4x256xf32> to vector<4x256xf32>
    %c0_2 = arith.constant 0 : index
    %c0_3 = arith.constant 0 : index
    %2 = vector.load %arg3[%c0_2, %c0_3] : memref<16x4xf32, #tpu.memory_space<vmem>>, vector<16x4xf32>
    %cst = arith.constant dense<0.000000e+00> : vector<16x256xf32>
    %3 = tpu.matmul %2, %1, %cst {dimension_numbers = #tpu.dot_dimension_numbers<[1], [0], [0], [1], [0, 0, 1, 1], [], []>} : vector<16x4xf32>, vector<4x256xf32>, vector<16x256xf32> -> vector<16x256xf32>
    %c0_4 = arith.constant 0 : index
    %c0_5 = arith.constant 0 : index
    %4 = vector.load %arg4[%c0_4, %c0_5] : memref<16x1xf32, #tpu.memory_space<vmem>>, vector<16x1xf32>
    %5 = vector.broadcast %4 : vector<16x1xf32> to vector<16x256xf32>
    %6 = arith.addf %3, %5 : vector<16x256xf32>
    %7 = arith.negf %6 : vector<16x256xf32>
    %8 = math.exp %7 : vector<16x256xf32>
    %cst_6 = arith.constant 1.000000e+00 : f32
    %9 = vector.broadcast %cst_6 : f32 to vector<16x256xf32>
    %10 = arith.addf %9, %8 : vector<16x256xf32>
    %11 = arith.divf %9, %10 : vector<16x256xf32>
    %12 = arith.mulf %6, %11 : vector<16x256xf32>
    %c0_7 = arith.constant 0 : index
    %c0_8 = arith.constant 0 : index
    %13 = vector.load %arg5[%c0_7, %c0_8] : memref<4x16xf32, #tpu.memory_space<vmem>>, vector<4x16xf32>
    %cst_9 = arith.constant dense<0.000000e+00> : vector<4x256xf32>
    %14 = tpu.matmul %13, %12, %cst_9 {dimension_numbers = #tpu.dot_dimension_numbers<[1], [0], [0], [1], [0, 0, 1, 1], [], []>} : vector<4x16xf32>, vector<16x256xf32>, vector<4x256xf32> -> vector<4x256xf32>
    %c0_10 = arith.constant 0 : index
    %c0_11 = arith.constant 0 : index
    %15 = vector.load %arg6[%c0_10, %c0_11] : memref<4x1xf32, #tpu.memory_space<vmem>>, vector<4x1xf32>
    %16 = vector.broadcast %15 : vector<4x1xf32> to vector<4x256xf32>
    %17 = arith.addf %14, %16 : vector<4x256xf32>
    %c0_12 = arith.constant 0 : index
    %c0_13 = arith.constant 0 : index
    %c0_14 = arith.constant 0 : index
    %18 = vector.load %arg7[%c0_12, %c0_13, %c0_14] : memref<1x4x256xf32, #tpu.memory_space<vmem>>, vector<1x4x256xf32>
    %19 = vector.shape_cast %18 : vector<1x4x256xf32> to vector<4x256xf32>
    %20 = vector.shape_cast %17 : vector<4x256xf32> to vector<1x4x256xf32>
    tpu.vector_store %arg7[%c0_12, %c0_13, %c0_14], %20 {strides = array<i32>} : memref<1x4x256xf32, #tpu.memory_space<vmem>>, vector<1x4x256xf32>,
    return
  }
  func.func @transform_0(%arg0: i32, %arg1: i32) -> (i32, i32, i32) {
    %c0_i32 = arith.constant 0 : i32
    %c0_i32_0 = arith.constant 0 : i32
    return %arg0, %c0_i32, %arg1 : i32, i32, i32
  }
  func.func @transform_1(%arg0: i32, %arg1: i32) -> (i32, i32) {
    %c0_i32 = arith.constant 0 : i32
    %c0_i32_0 = arith.constant 0 : i32
    %c0_i32_1 = arith.constant 0 : i32
    return %c0_i32, %c0_i32_0 : i32, i32
  }
  func.func @transform_2(%arg0: i32, %arg1: i32) -> (i32, i32) {
    %c0_i32 = arith.constant 0 : i32
    %c0_i32_0 = arith.constant 0 : i32
    %c0_i32_1 = arith.constant 0 : i32
    return %c0_i32, %c0_i32_0 : i32, i32
  }
  func.func @transform_3(%arg0: i32, %arg1: i32) -> (i32, i32) {
    %c0_i32 = arith.constant 0 : i32
    %c0_i32_0 = arith.constant 0 : i32
    %c0_i32_1 = arith.constant 0 : i32
    return %c0_i32, %c0_i32_0 : i32, i32
  }
  func.func @transform_4(%arg0: i32, %arg1: i32) -> (i32, i32) {
    %c0_i32 = arith.constant 0 : i32
    %c0_i32_0 = arith.constant 0 : i32
    %c0_i32_1 = arith.constant 0 : i32
    return %c0_i32, %c0_i32_0 : i32, i32
  }
  func.func @transform_5(%arg0: i32, %arg1: i32) -> (i32, i32, i32) {
    %c0_i32 = arith.constant 0 : i32
    %c0_i32_0 = arith.constant 0 : i32
    return %arg0, %c0_i32, %arg1 : i32, i32, i32
  }
}

</mosaic_0001>

<bundles_post_ra>
// kernel: _pointmlp_3d.1
= control target key start
LH: loop header
LB: loop body
LE: loop exit
PB: predicated region body
PF: predicated region fallthrough
CT: control target
= control target key end

     0   :  { %10 = vsyncpa [#allocation3], 0  ;;  %s938_s0 = inlined_call_operand.vmem [shape: f32[2,4,256], index: 0, kind: input, shape index: {}]   ;;  %s939_s1 = inlined_call_operand.vmem [shape: f32[16,4], index: 1, kind: input, shape index: {}]   ;;  %s940_s2 = inlined_call_operand.vmem [shape: f32[16,1], index: 2, kind: input, shape index: {}]   ;;  %s941_s3 = inlined_call_operand.vmem [shape: f32[4,16], index: 3, kind: input, shape index: {}]   ;;  %s942_s4 = inlined_call_operand.vmem [shape: f32[4,1], index: 4, kind: input, shape index: {}]   ;;  %s943_s5 = inlined_call_operand.hbm [shape: f32[2,4,256], index: 5, kind: output, shape index: {}]  }
   0x1   :  { %12 = vsyncpa [#allocation3 + $0x1], 0  ;;  %s775_s18 = smov 0   ;;  %s777_s19 = smov 0  }
   0x2   :  { %s779_s20 = smov 0   ;;  %s781_s21 = smov 0  }
   0x3   :  { %s783_s22 = smov 0   ;;  %s785_s23 = smov 0  }
   0x4 LB: > { %s563_s24 = sadd.s32 4294967295, %s742_s23   ;;  %s564_s25 = sadd.s32 4294967294, %s742_s23   ;;  %s742_s23 = sphi %s785_s23, %s18_s23   ;;  %s738_s22 = sphi %s783_s22, %s954_s22   ;;  %s734_s21 = sphi %s781_s21, %s953_s21   ;;  %s730_s20 = sphi %s779_s20, %s952_s20   ;;  %s726_s19 = sphi %s777_s19, %s951_s19   ;;  %s722_s18 = sphi %s775_s18, %s950_s18  }
   0x5   : > { %s30_s26 = sadd.s32 1, %s738_s22  ;;  %s151_s27 = sadd.s32 1, %s730_s20 }
   0x6   : > { %p32_p0 = scmp.ge.s32.totalorder %s30_s26, 2  ;;  %p161_p1 = scmp.ne.s32.totalorder %s730_s20, %s726_s19 }
   0x7   : > { %p162_p2 = scmp.eq.s32.totalorder %s563_s24, 1  ;;  %p167_p3 = scmp.ne.s32.totalorder %s726_s19, %s722_s18 }
   0x8   : > { %s956_s26 = smov (%p32_p0, %s30_s26), 0  ;;  %p168_p5 = scmp.eq.s32.totalorder %s564_s25, 1 }
   0x9   : > { %p815_p4 = por %p162_p2, %p161_p1  ;;  %s146_s29 = ssub.s32 %s738_s22, %s956_s26 }
   0xa   : > { %p567_p6 = scmp.ge.s32.totalorder %s742_s23, 1  ;;  %p149_p7 = scmp.eq.s32.totalorder %s146_s29, 0 }
   0xb   : > { %p822_p8 = por %p168_p5, %p167_p3  ;;  %p211_p9 = scmp.lt.s32.totalorder %s742_s23, 3 }
   0xc   : > { %s828_s6 = scalar_select %p149_p7, %s730_s20, %s151_s27  }
   0xd   : > { %p212_p10 = pnand %p567_p6, %p211_p9 }
   0xe   : > { %p244_p11 = scmp.lt.s32.totalorder (!%p212_p10), %s734_s21, 1  ;;  %s589_s11 = sshll.u32 (!%p212_p10), %s734_s21, 3 }
   0xf   : > { %215 = sbr.rel (%p212_p10) target bundleno = 346 (0x15a), region = 40  ;;  %s482_s14 = scalar_lea.hbm (!%p212_p10), %s943_s5, %s589_s11 }
  0x10   : > { %s486_s17 = sshll.u32 (!%p212_p10), %s482_s14, 4  ;;  %s684_s7 = scalar_lea.hbm (!%p212_p10), %s943_s5, 16  ;;  %s487_s17 = int_to_ptr.hbm [resolvable:$true] %s486_s17 }
  0x11   : > { %s678_s24 = sshra.s32 (!%p212_p10), %s487_s17, 4  ;;  %s679_s24 = int_to_ptr.hbm [resolvable:$true] %s678_s24 }
  0x12   : > { %s680_s25 = scalar_lea.hbm (!%p212_p10), %s679_s24, 8  ;;  %p685_p1 = scmp.lt.s32.totalorder (!%p212_p10), %s679_s24, %s943_s5 }
  0x13   : > { %p681_p12 = scmp.ne.s32.totalorder (!%p212_p10), %s679_s24, %s680_s25  ;;  %p686_p2 = scmp.lt.s32.totalorder (!%p212_p10), %s684_s7, %s680_s25 }
  0x14   : > { %v258_v0 = vld [vmem:[%s940_s2 + $0x8] sm:$0xff]  ;;  %v744_v1 = vmov 0   ;;  %s245_s9 = scalar_select %p244_p11, %s734_s21, 1  ;;  %v257_v3 = vld [vmem:[%s940_s2] sm:$0xff]  ;;  %vm280_vm0 = vcmask 1043456   ;;  %vm273_vm1 = vcmask 31744  }
  0x15   : > { %646 = vset.pattern.permute.xlu0 %v744_v1  ;;  %647 = vset.pattern.permute.xlu1 %v744_v1  ;;  %v255_v4 = vld [vmem:[%s939_s1] sm:$0xff]  ;;  %v256_v7 = vld [vmem:[%s939_s1 + $0x8] sm:$0xff]  ;;  %p682_p13 = pnand %p681_p12, %p815_p4  ;;  %p687_p3 = por %p686_p2, %p685_p1 }
  0x16   : > { %266 = vperm.xlu0 %646, %v258_v0   ;;  %s588_s10 = sshll.u32 %s245_s9, 3  ;;  %v412_v26 = vld [vmem:[%s942_s4] sm:$0xf]  ;;  %s240_s9 = sand.u32 1, %s726_s19  }
  0x17   : > { %s251_s13 = scalar_lea.vmem %s938_s0, %s588_s10  ;;  %415 = vperm.xlu1 %647, %v412_v26   ;;  %s568_s10 = sshll.u32 %s240_s9, 3 }
  0x18   : > { %v254_v2 = vld [vmem:[%s251_s13] sm:$0xff]  ;;  %s242_s15 = scalar_lea.vmem [#allocation2], %s568_s10  ;;  %s469_s21 = scalar_lea.sflag [#allocation3], %s240_s9 }
  0x19   : > { %270 = vst [vmem:[#allocation1] ss:$2 sm:$0xff] %v254_v2  ;;  %s484_s16 = sshll.u32 %s242_s15, 4  ;;  %p683_p0 = pneg %p682_p13  ;;  %s485_s16 = int_to_ptr.vmem [resolvable:$true] %s484_s16 }
  0x1b   : > { %p688_p5 = pnand %p687_p3, %p683_p0 }
  0x1e   : > { %261 = vperm.xlu0 %646, %v257_v3  }
  0x20   : > { %v271_v5 = vld.sshfl [vmem:[#allocation1] sm:$0xff pattern:$0x75316420]  ;;  %v272_v6 = vld.sshfl [vmem:[#allocation1 + $0x8] sm:$0xff pattern:$0x75316420] }
  0x21   : > { %571 = vmatpush.msk.msra.mxu0 %vm280_vm0, %v271_v5  ;;  %574 = vmatpush.msk.msra.mxu1 %vm280_vm0, %v272_v6 }
  0x22   : > { %572 = vmatmul.msk.f32.vlgmr.msra.gmra.mxu0 %vm273_vm1, %v255_v4  ;;  %575 = vmatmul.msk.f32.vlgmr.msra.gmra.mxu1 %vm273_vm1, %v255_v4 }
  0x2a   : > { %573 = vmatmul.msk.f32.gmra.mxu0 %vm273_vm1, %v256_v7  ;;  %576 = vmatmul.msk.f32.gmra.mxu1 %vm273_vm1, %v256_v7 }
  0x88   : > { %v267_v8 = vpop.permute.xlu0 %266 }
  0x90   : > { %v262_v9 = vpop.permute.xlu0 %261 }
  0x9f   : > { %v302_v10 = vpop.f32.mrf.mxu0  ;;  %v325_v11 = vpop.f32.mrf.mxu1 }
  0xa0   : > { %v849_v12 = vadd.f32 %v302_v10, %v262_v9  ;;  %v851_v13 = vadd.f32 %v325_v11, %v262_v9  ;;  %v411_v11 = vld [vmem:[%s941_s3] sm:$0xf] }
  0xa2   : > { %v577_v14 = vmul.f32 -1.442695, %v849_v12  ;;  %v578_v15 = vmul.f32 -1.442695, %v851_v13 }
  0xa4   : > { %648 = vpow2.f32 %v577_v14 }
  0xa5   : > { %650 = vpow2.f32 %v578_v15 }
  0xa7   : > { %v305_v16 = vpop.f32.mrf.mxu0  ;;  %v328_v17 = vpop.f32.mrf.mxu1 }
  0xa8   : > { %v855_v18 = vadd.f32 %v305_v16, %v267_v8  ;;  %v857_v19 = vadd.f32 %v328_v17, %v267_v8  ;;  %v416_v16 = vpop.permute.xlu1 %415 }
  0xaa   : > { %v649_v20 = vpop.eup %648  ;;  %v579_v21 = vmul.f32 -1.442695, %v855_v18  ;;  %v580_v24 = vmul.f32 -1.442695, %v857_v19 }
  0xab   : > { %v651_v22 = vpop.eup %650  ;;  %v343_v23 = vadd.f32 1.0, %v649_v20 }
  0xac   : > { %v861_v25 = vadd.f32 1.0, %v651_v22  ;;  %652 = vpow2.f32 %v579_v21 }
  0xad   : > { %654 = vrcp.f32 %v343_v23  ;;  %vm352_vm2 = vweird.f32 %v343_v23  ;;  %v358_v40 = vand.u32 2147483648, %v343_v23  ;;  %v356_v45 = vand.u32 2147483647, %v343_v23 }
  0xae   : > { %656 = vrcp.f32 %v861_v25  ;;  %vm367_vm4 = vweird.f32 %v861_v25  ;;  %v371_v48 = vand.u32 2147483647, %v861_v25  ;;  %v373_v51 = vand.u32 2147483648, %v861_v25 }
  0xaf   : > { %658 = vpow2.f32 %v580_v24  ;;  %v359_v54 = vor.u32 1.1754944e-38, %v358_v40  ;;  %vm357_vm13 = vcmp.eq.f32.partialorder %v356_v45, 8.507059e+37 }
  0xb0   : > { %v374_v6 = vor.u32 1.1754944e-38, %v373_v51 }
  0xb2   : > { %v653_v27 = vpop.eup %652 }
  0xb3   : > { %v655_v28 = vpop.eup %654  ;;  %v345_v29 = vadd.f32 1.0, %v653_v27 }
  0xb4   : > { %v867_v30 = vpop.eup %656  ;;  %v348_v31 = vmul.f32 %v655_v28, %v343_v23  ;;  %vm353_vm3 = vweird.f32 %v655_v28 }
  0xb5   : > { %v659_v32 = vpop.eup %658  ;;  %660 = vrcp.f32 %v345_v29  ;;  %v363_v35 = vmul.f32 %v867_v30, %v861_v25  ;;  %v388_v46 = vand.u32 2147483648, %v345_v29  ;;  %v386_v50 = vand.u32 2147483647, %v345_v29  ;;  %vm876_vm6 = vmor %vm352_vm2, %vm353_vm3 }
  0xb6   : > { %v346_v33 = vadd.f32 1.0, %v659_v32  ;;  %v349_v34 = vsub.f32 1.0, %v348_v31  ;;  %vm368_vm7 = vweird.f32 %v867_v30  ;;  %vm382_vm8 = vweird.f32 %v345_v29 }
  0xb7   : > { %v364_v36 = vsub.f32 1.0, %v363_v35  ;;  %v389_v59 = vor.u32 1.1754944e-38, %v388_v46  ;;  %vm387_vm11 = vcmp.eq.f32.partialorder %v386_v50, 8.507059e+37  ;;  %vm886_vm14 = vmor %vm367_vm4, %vm368_vm7  ;;  %vm372_vm2 = vcmp.eq.f32.partialorder %v371_v48, 8.507059e+37 }
  0xb8   : > { %662 = vrcp.f32 %v346_v33  ;;  %v350_v37 = vmul.f32 %v655_v28, %v349_v34  ;;  %v403_v57 = vand.u32 2147483648, %v346_v33  ;;  %v401_v61 = vand.u32 2147483647, %v346_v33 }
  0xb9   : > { %v365_v41 = vmul.f32 %v867_v30, %v364_v36  ;;  %vm397_vm12 = vweird.f32 %v346_v33  ;;  %vm418_vm3 = vcmask 130048  }
  0xba   : > { %v351_v44 = vadd.f32 %v655_v28, %v350_v37  ;;  %v404_v5 = vor.u32 1.1754944e-38, %v403_v57  ;;  %vm402_vm1 = vcmp.eq.f32.partialorder %v401_v61, 8.507059e+37 }
  0xbb   : > { %v661_v38 = vpop.eup %660  ;;  %v366_v55 = vadd.f32 %v867_v30, %v365_v41 }
  0xbc   : > { %v378_v39 = vmul.f32 %v661_v38, %v345_v29  ;;  %vm383_vm5 = vweird.f32 %v661_v38  ;;  %v355_v58 = vsel %vm876_vm6, %v655_v28, %v351_v44 }
  0xbd   : > { %vm384_vm9 = vmor %vm382_vm8, %vm383_vm5  ;;  %v360_v2 = vsel %vm357_vm13, %v359_v54, %v355_v58  ;;  %v370_v3 = vsel %vm886_vm14, %v867_v30, %v366_v55 }
  0xbe   : > { %v663_v42 = vpop.eup %662  ;;  %v379_v43 = vsub.f32 1.0, %v378_v39  ;;  %v407_v9 = vmul.f32 %v360_v2, %v849_v12  ;;  %v375_v10 = vsel %vm372_vm2, %v374_v6, %v370_v3 }
  0xbf   : > { %v393_v47 = vmul.f32 %v663_v42, %v346_v33  ;;  %vm398_vm10 = vweird.f32 %v663_v42  ;;  %v408_v15 = vmul.f32 %v375_v10, %v851_v13 }
  0xc0   : > { %v380_v49 = vmul.f32 %v661_v38, %v379_v43  ;;  %vm399_vm15 = vmor %vm397_vm12, %vm398_vm10 }
  0xc1   : > { %v394_v52 = vsub.f32 1.0, %v393_v47 }
  0xc2   : > { %v381_v56 = vadd.f32 %v661_v38, %v380_v49 }
  0xc3   : > { %v395_v60 = vmul.f32 %v663_v42, %v394_v52 }
  0xc4   : > { %v385_v62 = vsel %vm384_vm9, %v661_v38, %v381_v56 }
  0xc5   : > { %v390_v0 = vsel %vm387_vm11, %v389_v59, %v385_v62  ;;  %v396_v1 = vadd.f32 %v663_v42, %v395_v60 }
  0xc6   : > { %v409_v4 = vmul.f32 %v390_v0, %v855_v18 }
  0xc7   : > { %v400_v7 = vsel %vm399_vm15, %v663_v42, %v396_v1 }
  0xc8   : > { %436 = vmatpush.msra.mxu2 %v409_v4  ;;  %v405_v8 = vsel %vm402_vm1, %v404_v5, %v400_v7 }
  0xc9   : > { %v410_v14 = vmul.f32 %v405_v8, %v857_v19 }
  0xca   : > { %437 = vmatpush.msra.mxu2 %v407_v9 }
  0xcb   : > { %456 = vmatpush.msra.mxu3 %v410_v14  ;;  %581 = vmatmul.msk.f32.vlgmr.msra.gmra.mxu2 %vm418_vm3, %v411_v11 }
  0xcd   : > { %457 = vmatpush.msra.mxu3 %v408_v15 }
  0xce   : > { %582 = vmatmul.msk.f32.vlgmr.msra.gmra.mxu3 %vm418_vm3, %v411_v11 }
 0x14e   : > { %v439_v12 = vpop.f32.mrf.mxu2 }
 0x14f   : > { %v440_v19 = vadd.f32 %v439_v12, %v416_v16 }
 0x151   : > { %v459_v17 = vpop.f32.mrf.mxu3 }
 0x152   : > { %v460_v18 = vadd.f32 %v459_v17, %v416_v16 }
 0x154   : > { %v464_v13 = vrot.slane %v460_v18, 4 }
 0x156   : > { %v465_v20 = vsel %vm280_vm0, %v440_v19, %v464_v13 }
 0x157   : > { %467 = vst [vmem:[%s242_s15] sm:$0xff] %v465_v20 }
 0x158   : > { %691 = shalt.err (!%p688_p5)
}
 0x159   : > { %590 = dma.vmem_to_hbm [thread:$0]  (%p815_p4), %s485_s16, 128, %s487_s17, %s469_s21  }
 0x15a PF: > { %p596_p6 = scmp.ge.s32.totalorder %s742_s23, 2  ;;  %s498_s9 = sand.u32 1, %s722_s18  }
 0x15b   : > { %s499_s11 = scalar_lea.sflag [#allocation3], %s498_s9 }
 0x15c   : > { %p593_p7 = pnand %p596_p6, %p822_p8 }
 0x15e   : > { %p594_p9 = pneg %p593_p7 }
 0x160   : > { %717 = dma.done.wait (%p594_p9), %s499_s11, 128  }
 0x161   : > { %719 = vsyncadd (%p594_p9), %s499_s11, 4294967168  ;;  %s18_s23 = sadd.s32 1, %s742_s23   ;;  %s950_s18 = smov %s726_s19 }
 0x162   : > { %p15_p10 = scmp.ge.s32.totalorder %s18_s23, 4   ;;  %s951_s19 = smov %s730_s20 }
 0x163   : > { %s952_s20 = smov %s828_s6  ;;  %s953_s21 = smov %s738_s22 }
 0x164   : > { %s954_s22 = smov %s956_s26  ;;  %17 = sbr.rel (!%p15_p10) target bundleno = 4 (0x4), region = 75 }
 0x169   :  { %505 = vsyncpa [#allocation3], 1 }
 0x16a   :  { %507 = vsyncpa [#allocation3 + $0x1], 1 }

</bundles_post_ra>
